<compile_context>
chip_gen: v5e
topology: v5e:2x2
jax: 0.10.0
libtpu: 0.0.40
codegen_flags: <defaults>
</compile_context>

<pallas_src>
import functools

import jax
import jax.numpy as jnp
from jax import lax
from jax.experimental import pallas as pl
from jax.experimental.pallas import tpu as pltpu

_INV_SQRT2 = 0.7071067811865476
_SQRT_2_OVER_PI = 0.7978845608028654
_TB_MAX = 16384   # rows per grid step; stripe loop keeps live intermediates per-stripe only


def _round_up(n, m):
    return (n + m - 1) // m * m


def _cdiv(a, b):
    return (a + b - 1) // b


def _gelu_exact(x):
    # torch.nn.GELU() default (erf-based).
    return 0.5 * x * (1.0 + lax.erf(x * _INV_SQRT2))


def _gelu_tanh(x):
    # torch.nn.GELU(approximate='tanh'); tanh runs on the EUP slot.
    return 0.5 * x * (1.0 + jnp.tanh(_SQRT_2_OVER_PI * (x + 0.044715 * x * x * x)))


def _pick_stripe(tb):
    # Largest lane-stripe (multiple of 128) that divides the tile; target ~512 lanes.
    for s in (512, 384, 256, 128):
        if tb % s == 0:
            return s
    return tb


def _make_kernel(gelu):
    def mlp_kernel(x_ref,
                   w0_ref, b0_ref,
                   w1_ref, b1_ref,
                   w2_ref, b2_ref,
                   w3_ref, b3_ref,
                   o_ref):
        tb = x_ref.shape[1]
        stripe = _pick_stripe(tb)
        n_stripes = tb // stripe

        # Hoist the small weight/bias loads out of the stripe loop (weights are bf16).
        w0 = w0_ref[...]; b0 = b0_ref[...]
        w1 = w1_ref[...]; b1 = b1_ref[...]
        w2 = w2_ref[...]; b2 = b2_ref[...]
        w3 = w3_ref[...]; b3 = b3_ref[...]

        def stripe_body(c0):
            # Feature-major stripe: (feat, stripe) -> every op is lane-dense.
            h = x_ref[:, pl.ds(c0, stripe)]                                     # (8,  S) f32
            h = gelu(jnp.dot(w0, h.astype(jnp.bfloat16),
                             preferred_element_type=jnp.float32) + b0)          # (64, S)
            h = gelu(jnp.dot(w1, h.astype(jnp.bfloat16),
                             preferred_element_type=jnp.float32) + b1)          # (32, S)
            h = gelu(jnp.dot(w2, h.astype(jnp.bfloat16),
                             preferred_element_type=jnp.float32) + b2)          # (16, S)
            o = jnp.dot(w3, h.astype(jnp.bfloat16),
                        preferred_element_type=jnp.float32) + b3                # (4,  S)
            o_ref[:, pl.ds(c0, stripe)] = o.astype(o_ref.dtype)

        if n_stripes == 1:
            stripe_body(0)
        else:
            @pl.loop(0, n_stripes)
            def _(s):
                stripe_body(pl.multiple_of(s * stripe, stripe))

    return mlp_kernel


def _choose_tile(batch, tile_rows):
    if tile_rows is not None:
        tb = _round_up(tile_rows, 128)
    else:
        b128 = _round_up(max(batch, 1), 128)
        # Aim for >= 2 grid steps when the batch allows it (v7x megacore), cap at _TB_MAX.
        tb = min(_TB_MAX, _round_up(_cdiv(b128, 2), 128))
    bp = _round_up(max(batch, 1), tb)
    return tb, bp


@functools.partial(jax.jit, static_argnames=("tile_rows", "approximate_gelu"))
def mynet_forward(x, params, tile_rows=None, approximate_gelu=False):
    """x: (B, 8) float32. params: w0..w3 as (out,in), b0..b3 as (out,1). Returns (B, 4)."""
    B = x.shape[0]
    TB, Bp = _choose_tile(B, tile_rows)
    n_steps = Bp // TB

    # Feature-major + zero-pad the batch onto the 128-lane axis (fused under this jit).
    xt = jnp.zeros((8, Bp), jnp.float32).at[:, :B].set(x.T.astype(jnp.float32))

    args = (xt,
            params["w0"].astype(jnp.bfloat16), params["b0"].astype(jnp.float32),
            params["w1"].astype(jnp.bfloat16), params["b1"].astype(jnp.float32),
            params["w2"].astype(jnp.bfloat16), params["b2"].astype(jnp.float32),
            params["w3"].astype(jnp.bfloat16), params["b3"].astype(jnp.float32))

    # Weights / biases: constant index map -> fetched once, VMEM-resident across steps.
    resident = lambda a: pl.BlockSpec(a.shape, lambda i: (0, 0))
    in_specs = [pl.BlockSpec((8, TB), lambda i: (0, i))] + [resident(a) for a in args[1:]]

    flops = 2 * Bp * (8 * 64 + 64 * 32 + 32 * 16 + 16 * 4)
    param_bytes = sum(int(a.size) * a.dtype.itemsize for a in args[1:])
    bytes_accessed = int(xt.size) * 4 + Bp * 4 * 4 + param_bytes

    out_t = pl.pallas_call(
        _make_kernel(_gelu_tanh if approximate_gelu else _gelu_exact),
        out_shape=jax.ShapeDtypeStruct((4, Bp), jnp.float32),
        grid=(n_steps,),
        in_specs=in_specs,
        out_specs=pl.BlockSpec((4, TB), lambda i: (0, i)),
        compiler_params=pltpu.CompilerParams(
            dimension_semantics=("parallel",),       # megacore sharding on v7x
            vmem_limit_bytes=32 * 1024 * 1024),      # raises v5e's 16 MiB scoped default
        cost_estimate=pl.CostEstimate(
            flops=int(flops),
            transcendentals=int(Bp * (64 + 32 + 16)),
            bytes_accessed=int(bytes_accessed)),
    )(*args)

    # Strip batch padding and return row-major (B, 4), as the PyTorch module does.
    return out_t[:, :B].T


def init_params(key):
    # PyTorch nn.Linear layout: W (out, in), bias stored here as (out, 1).
    dims = [(8, 64), (64, 32), (32, 16), (16, 4)]
    params = {}
    for i, (fin, fout) in enumerate(dims):
        key, kw, kb = jax.random.split(key, 3)
        bound = fin ** -0.5
        params[f"w{i}"] = jax.random.uniform(kw, (fout, fin), jnp.float32,
                                             minval=-bound, maxval=bound)
        params[f"b{i}"] = jax.random.uniform(kb, (fout, 1), jnp.float32,
                                             minval=-bound, maxval=bound)
    return params


def reference_forward(x, params, *, matmul_dtype=jnp.float32, approximate=False):
    h = x.astype(jnp.float32)
    for i in range(4):
        w = params[f"w{i}"].astype(matmul_dtype)
        pre = jnp.dot(h.astype(matmul_dtype), w.T,
                      preferred_element_type=jnp.float32) + params[f"b{i}"].T
        h = jax.nn.gelu(pre, approximate=approximate) if i < 3 else pre
    return h


if __name__ == "__main__":
    key = jax.random.PRNGKey(0)
    kx, kx2, kp = jax.random.split(key, 3)
    params = init_params(kp)

    # Small check: batch = 8, in_features = 8 (single-step grid, TB = 128).
    x = jax.random.normal(kx, (8, 8), jnp.float32)
    out = jax.block_until_ready(mynet_forward(x, params))
    assert out.shape == (8, 4)
    ref_sim = reference_forward(x, params, matmul_dtype=jnp.bfloat16)   # same bf16-MXU math
    ref_f32 = reference_forward(x, params)                              # full-f32 semantics
    assert jnp.allclose(out, ref_sim, atol=2e-4, rtol=2e-4)
    assert jnp.allclose(out, ref_f32, atol=6e-2, rtol=6e-2)

    # Batch padding + 2-step (pipelined / megacore-shardable) grid: B=300 -> TB=256, grid=(2,).
    x2 = jax.random.normal(kx2, (300, 8), jnp.float32)
    out2 = jax.block_until_ready(mynet_forward(x2, params))
    assert out2.shape == (300, 4)
    ref2_sim = reference_forward(x2, params, matmul_dtype=jnp.bfloat16)
    ref2_f32 = reference_forward(x2, params)
    assert jnp.allclose(out2, ref2_sim, atol=2e-4, rtol=2e-4)
    assert jnp.allclose(out2, ref2_f32, atol=6e-2, rtol=6e-2)

    # Optional tanh-GELU (EUP) fast path, checked against the matching reference.
    out3 = jax.block_until_ready(mynet_forward(x2, params, approximate_gelu=True))
    ref3 = reference_forward(x2, params, matmul_dtype=jnp.bfloat16, approximate=True)
    assert jnp.allclose(out3, ref3, atol=5e-4, rtol=5e-4)

    print("KERNEL_OK")
</pallas_src>

<mosaic_0001>
module attributes {stable_mosaic.version = 11 : i64} {
  func.func @mlp_kernel(%arg0: i32, %arg1: memref<8x128xf32, #tpu.memory_space<vmem>>, %arg2: memref<64x8xbf16, #tpu.memory_space<vmem>>, %arg3: memref<64x1xf32, #tpu.memory_space<vmem>>, %arg4: memref<32x64xbf16, #tpu.memory_space<vmem>>, %arg5: memref<32x1xf32, #tpu.memory_space<vmem>>, %arg6: memref<16x32xbf16, #tpu.memory_space<vmem>>, %arg7: memref<16x1xf32, #tpu.memory_space<vmem>>, %arg8: memref<4x16xbf16, #tpu.memory_space<vmem>>, %arg9: memref<4x1xf32, #tpu.memory_space<vmem>>, %arg10: memref<4x128xf32, #tpu.memory_space<vmem>>) attributes {dimension_semantics = [#tpu.dimension_semantics<parallel>], iteration_bounds = array<i64: 1>, scalar_prefetch = 0 : i64, scratch_operands = 0 : i64, tpu.core_type = #tpu.core_type<tc>, window_params = [{transform_indices = @transform_0, window_bounds = array<i64: 8, 128>}, {pipeline_mode = #tpu.pipeline_mode<synchronous>, transform_indices = @transform_1, window_bounds = array<i64: 64, 8>}, {pipeline_mode = #tpu.pipeline_mode<synchronous>, transform_indices = @transform_2, window_bounds = array<i64: 64, 1>}, {pipeline_mode = #tpu.pipeline_mode<synchronous>, transform_indices = @transform_3, window_bounds = array<i64: 32, 64>}, {pipeline_mode = #tpu.pipeline_mode<synchronous>, transform_indices = @transform_4, window_bounds = array<i64: 32, 1>}, {pipeline_mode = #tpu.pipeline_mode<synchronous>, transform_indices = @transform_5, window_bounds = array<i64: 16, 32>}, {pipeline_mode = #tpu.pipeline_mode<synchronous>, transform_indices = @transform_6, window_bounds = array<i64: 16, 1>}, {pipeline_mode = #tpu.pipeline_mode<synchronous>, transform_indices = @transform_7, window_bounds = array<i64: 4, 16>}, {pipeline_mode = #tpu.pipeline_mode<synchronous>, transform_indices = @transform_8, window_bounds = array<i64: 4, 1>}, {transform_indices = @transform_9, window_bounds = array<i64: 4, 128>}]} {
    %c0 = arith.constant 0 : index
    %c0_0 = arith.constant 0 : index
    %0 = vector.load %arg2[%c0, %c0_0] : memref<64x8xbf16, #tpu.memory_space<vmem>>, vector<64x8xbf16>
    %c0_1 = arith.constant 0 : index
    %c0_2 = arith.constant 0 : index
    %1 = vector.load %arg3[%c0_1, %c0_2] : memref<64x1xf32, #tpu.memory_space<vmem>>, vector<64x1xf32>
    %c0_3 = arith.constant 0 : index
    %c0_4 = arith.constant 0 : index
    %2 = vector.load %arg4[%c0_3, %c0_4] : memref<32x64xbf16, #tpu.memory_space<vmem>>, vector<32x64xbf16>
    %c0_5 = arith.constant 0 : index
    %c0_6 = arith.constant 0 : index
    %3 = vector.load %arg5[%c0_5, %c0_6] : memref<32x1xf32, #tpu.memory_space<vmem>>, vector<32x1xf32>
    %c0_7 = arith.constant 0 : index
    %c0_8 = arith.constant 0 : index
    %4 = vector.load %arg6[%c0_7, %c0_8] : memref<16x32xbf16, #tpu.memory_space<vmem>>, vector<16x32xbf16>
    %c0_9 = arith.constant 0 : index
    %c0_10 = arith.constant 0 : index
    %5 = vector.load %arg7[%c0_9, %c0_10] : memref<16x1xf32, #tpu.memory_space<vmem>>, vector<16x1xf32>
    %c0_11 = arith.constant 0 : index
    %c0_12 = arith.constant 0 : index
    %6 = vector.load %arg8[%c0_11, %c0_12] : memref<4x16xbf16, #tpu.memory_space<vmem>>, vector<4x16xbf16>
    %c0_13 = arith.constant 0 : index
    %c0_14 = arith.constant 0 : index
    %7 = vector.load %arg9[%c0_13, %c0_14] : memref<4x1xf32, #tpu.memory_space<vmem>>, vector<4x1xf32>
    %c0_15 = arith.constant 0 : index
    %c0_16 = arith.constant 0 : index
    %8 = vector.load %arg1[%c0_15, %c0_16] : memref<8x128xf32, #tpu.memory_space<vmem>>, vector<8x128xf32>
    %9 = arith.truncf %8 : vector<8x128xf32> to vector<8x128xbf16>
    %cst = arith.constant dense<0.000000e+00> : vector<64x128xf32>
    %10 = tpu.matmul %0, %9, %cst {dimension_numbers = #tpu.dot_dimension_numbers<[1], [0], [0], [1], [0, 0, 1, 1], [], []>} : vector<64x8xbf16>, vector<8x128xbf16>, vector<64x128xf32> -> vector<64x128xf32>
    %11 = vector.broadcast %1 : vector<64x1xf32> to vector<64x128xf32>
    %12 = arith.addf %10, %11 : vector<64x128xf32>
    %cst_17 = arith.constant 5.000000e-01 : f32
    %13 = vector.broadcast %cst_17 : f32 to vector<64x128xf32>
    %14 = arith.mulf %13, %12 : vector<64x128xf32>
    %cst_18 = arith.constant 0.707106769 : f32
    %15 = vector.broadcast %cst_18 : f32 to vector<64x128xf32>
    %16 = arith.mulf %12, %15 : vector<64x128xf32>
    %17 = math.erf %16 : vector<64x128xf32>
    %cst_19 = arith.constant 1.000000e+00 : f32
    %18 = vector.broadcast %cst_19 : f32 to vector<64x128xf32>
    %19 = arith.addf %18, %17 : vector<64x128xf32>
    %20 = arith.mulf %14, %19 : vector<64x128xf32>
    %21 = arith.truncf %20 : vector<64x128xf32> to vector<64x128xbf16>
    %cst_20 = arith.constant dense<0.000000e+00> : vector<32x128xf32>
    %22 = tpu.matmul %2, %21, %cst_20 {dimension_numbers = #tpu.dot_dimension_numbers<[1], [0], [0], [1], [0, 0, 1, 1], [], []>} : vector<32x64xbf16>, vector<64x128xbf16>, vector<32x128xf32> -> vector<32x128xf32>
    %23 = vector.broadcast %3 : vector<32x1xf32> to vector<32x128xf32>
    %24 = arith.addf %22, %23 : vector<32x128xf32>
    %cst_21 = arith.constant 5.000000e-01 : f32
    %25 = vector.broadcast %cst_21 : f32 to vector<32x128xf32>
    %26 = arith.mulf %25, %24 : vector<32x128xf32>
    %cst_22 = arith.constant 0.707106769 : f32
    %27 = vector.broadcast %cst_22 : f32 to vector<32x128xf32>
    %28 = arith.mulf %24, %27 : vector<32x128xf32>
    %29 = math.erf %28 : vector<32x128xf32>
    %cst_23 = arith.constant 1.000000e+00 : f32
    %30 = vector.broadcast %cst_23 : f32 to vector<32x128xf32>
    %31 = arith.addf %30, %29 : vector<32x128xf32>
    %32 = arith.mulf %26, %31 : vector<32x128xf32>
    %33 = arith.truncf %32 : vector<32x128xf32> to vector<32x128xbf16>
    %cst_24 = arith.constant dense<0.000000e+00> : vector<16x128xf32>
    %34 = tpu.matmul %4, %33, %cst_24 {dimension_numbers = #tpu.dot_dimension_numbers<[1], [0], [0], [1], [0, 0, 1, 1], [], []>} : vector<16x32xbf16>, vector<32x128xbf16>, vector<16x128xf32> -> vector<16x128xf32>
    %35 = vector.broadcast %5 : vector<16x1xf32> to vector<16x128xf32>
    %36 = arith.addf %34, %35 : vector<16x128xf32>
    %cst_25 = arith.constant 5.000000e-01 : f32
    %37 = vector.broadcast %cst_25 : f32 to vector<16x128xf32>
    %38 = arith.mulf %37, %36 : vector<16x128xf32>
    %cst_26 = arith.constant 0.707106769 : f32
    %39 = vector.broadcast %cst_26 : f32 to vector<16x128xf32>
    %40 = arith.mulf %36, %39 : vector<16x128xf32>
    %41 = math.erf %40 : vector<16x128xf32>
    %cst_27 = arith.constant 1.000000e+00 : f32
    %42 = vector.broadcast %cst_27 : f32 to vector<16x128xf32>
    %43 = arith.addf %42, %41 : vector<16x128xf32>
    %44 = arith.mulf %38, %43 : vector<16x128xf32>
    %45 = arith.truncf %44 : vector<16x128xf32> to vector<16x128xbf16>
    %cst_28 = arith.constant dense<0.000000e+00> : vector<4x128xf32>
    %46 = tpu.matmul %6, %45, %cst_28 {dimension_numbers = #tpu.dot_dimension_numbers<[1], [0], [0], [1], [0, 0, 1, 1], [], []>} : vector<4x16xbf16>, vector<16x128xbf16>, vector<4x128xf32> -> vector<4x128xf32>
    %47 = vector.broadcast %7 : vector<4x1xf32> to vector<4x128xf32>
    %48 = arith.addf %46, %47 : vector<4x128xf32>
    %c0_29 = arith.constant 0 : index
    %c0_30 = arith.constant 0 : index
    %49 = vector.load %arg10[%c0_29, %c0_30] : memref<4x128xf32, #tpu.memory_space<vmem>>, vector<4x128xf32>
    tpu.vector_store %arg10[%c0_29, %c0_30], %48 {strides = array<i32>} : memref<4x128xf32, #tpu.memory_space<vmem>>, vector<4x128xf32>,
    return
  }
  func.func @transform_0(%arg0: i32) -> (i32, i32) {
    %c0_i32 = arith.constant 0 : i32
    %c0_i32_0 = arith.constant 0 : i32
    return %c0_i32, %arg0 : i32, i32
  }
  func.func @transform_1(%arg0: i32) -> (i32, i32) {
    %c0_i32 = arith.constant 0 : i32
    %c0_i32_0 = arith.constant 0 : i32
    %c0_i32_1 = arith.constant 0 : i32
    return %c0_i32, %c0_i32_0 : i32, i32
  }
  func.func @transform_2(%arg0: i32) -> (i32, i32) {
    %c0_i32 = arith.constant 0 : i32
    %c0_i32_0 = arith.constant 0 : i32
    %c0_i32_1 = arith.constant 0 : i32
    return %c0_i32, %c0_i32_0 : i32, i32
  }
  func.func @transform_3(%arg0: i32) -> (i32, i32) {
    %c0_i32 = arith.constant 0 : i32
    %c0_i32_0 = arith.constant 0 : i32
    %c0_i32_1 = arith.constant 0 : i32
    return %c0_i32, %c0_i32_0 : i32, i32
  }
  func.func @transform_4(%arg0: i32) -> (i32, i32) {
    %c0_i32 = arith.constant 0 : i32
    %c0_i32_0 = arith.constant 0 : i32
    %c0_i32_1 = arith.constant 0 : i32
    return %c0_i32, %c0_i32_0 : i32, i32
  }
  func.func @transform_5(%arg0: i32) -> (i32, i32) {
    %c0_i32 = arith.constant 0 : i32
    %c0_i32_0 = arith.constant 0 : i32
    %c0_i32_1 = arith.constant 0 : i32
    return %c0_i32, %c0_i32_0 : i32, i32
  }
  func.func @transform_6(%arg0: i32) -> (i32, i32) {
    %c0_i32 = arith.constant 0 : i32
    %c0_i32_0 = arith.constant 0 : i32
    %c0_i32_1 = arith.constant 0 : i32
    return %c0_i32, %c0_i32_0 : i32, i32
  }
  func.func @transform_7(%arg0: i32) -> (i32, i32) {
    %c0_i32 = arith.constant 0 : i32
    %c0_i32_0 = arith.constant 0 : i32
    %c0_i32_1 = arith.constant 0 : i32
    return %c0_i32, %c0_i32_0 : i32, i32
  }
  func.func @transform_8(%arg0: i32) -> (i32, i32) {
    %c0_i32 = arith.constant 0 : i32
    %c0_i32_0 = arith.constant 0 : i32
    %c0_i32_1 = arith.constant 0 : i32
    return %c0_i32, %c0_i32_0 : i32, i32
  }
  func.func @transform_9(%arg0: i32) -> (i32, i32) {
    %c0_i32 = arith.constant 0 : i32
    %c0_i32_0 = arith.constant 0 : i32
    return %c0_i32, %arg0 : i32, i32
  }
}

</mosaic_0001>

<bundles_post_ra>
// kernel: mynet_forward.1
= control target key start
LH: loop header
LB: loop body
LE: loop exit
PB: predicated region body
PF: predicated region fallthrough
CT: control target
= control target key end

     0   :  { %v1000_v0 = vmov 0   ;;  %vm138_vm0 = vcmask 1043456   ;;  %vm125_vm1 = vcmask 64512   ;;  %s1546_s2 = inlined_call_operand.vmem [shape: f32[64,1], index: 2, kind: input, shape index: {}]   ;;  %s1547_s0 = inlined_call_operand.vmem [shape: f32[8,128], index: 0, kind: input, shape index: {}]   ;;  %s1548_s1 = inlined_call_operand.vmem [shape: bf16[64,8], index: 1, kind: input, shape index: {}]   ;;  %s1549_s4 = inlined_call_operand.vmem [shape: f32[32,1], index: 4, kind: input, shape index: {}]   ;;  %s1550_s6 = inlined_call_operand.vmem [shape: f32[16,1], index: 6, kind: input, shape index: {}]   ;;  %s1551_s8 = inlined_call_operand.vmem [shape: f32[4,1], index: 8, kind: input, shape index: {}]   ;;  %s1552_s3 = inlined_call_operand.vmem [shape: bf16[32,64], index: 3, kind: input, shape index: {}]   ;;  %s1553_s5 = inlined_call_operand.vmem [shape: bf16[16,32], index: 5, kind: input, shape index: {}]   ;;  %s1554_s7 = inlined_call_operand.vmem [shape: bf16[4,16], index: 7, kind: input, shape index: {}]   ;;  %s1555_s9 = inlined_call_operand.vmem [shape: f32[4,128], index: 9, kind: output, shape index: {}]  }
   0x1   :  { %969 = vset.pattern.permute.xlu0 %v1000_v0  ;;  %v47_v1 = vld [vmem:[%s1546_s2 + $0x30] sm:$0xff]  ;;  %v63_v2 = vld [vmem:[%s1547_s0] sm:$0xff]  ;;  %970 = vset.pattern.permute.xlu1 %v1000_v0  ;;  %v963_v7 = vld [vmem:[%s1548_s1 + $0x18] sm:$0xff] }
   0x2   :  { %97 = vperm.xlu0 %969, %v47_v1   ;;  %v64_v3 = vpack.c.bf16 %v63_v2, %v63_v2  ;;  %v45_v4 = vld [vmem:[%s1546_s2 + $0x20] sm:$0xff]  ;;  %971 = vset.pattern.permute.xlu2 %v1000_v0  ;;  %v48_v8 = vld [vmem:[%s1546_s2 + $0x38] sm:$0xff]  ;;  %v46_v9 = vld [vmem:[%s1546_s2 + $0x28] sm:$0xff] }
   0x3   :  { %87 = vperm.xlu1 %970, %v45_v4   ;;  %v960_v6 = vld [vmem:[%s1548_s1] sm:$0xff]  ;;  %v43_v10 = vld [vmem:[%s1546_s2 + $0x10] sm:$0xff]  ;;  %v44_v11 = vld [vmem:[%s1546_s2 + $0x18] sm:$0xff] }
   0x4   :  { %v140_v5 = vsel %vm138_vm0, %v64_v3, 0  ;;  %77 = vperm.xlu2 %971, %v43_v10   ;;  %v41_v12 = vld [vmem:[%s1546_s2] sm:$0xff]  ;;  %v42_v13 = vld [vmem:[%s1546_s2 + $0x8] sm:$0xff]  ;;  %v55_v15 = vld [vmem:[%s1549_s4 + $0x10] sm:$0xff] }
   0x5   :  { %149 = vmatpush.bf16.msra.mxu0 %v140_v5  ;;  %967 = vmatpush.bf16.msra.mxu3 %v140_v5  ;;  %v961_v14 = vld [vmem:[%s1548_s1 + $0x8] sm:$0xff]  ;;  %v56_v16 = vld [vmem:[%s1549_s4 + $0x18] sm:$0xff]  ;;  %v53_v17 = vld [vmem:[%s1549_s4] sm:$0xff] }
   0x6   :  { %v54_v18 = vld [vmem:[%s1549_s4 + $0x8] sm:$0xff]  ;;  %v59_v19 = vld [vmem:[%s1550_s6] sm:$0xff]  ;;  %v962_v21 = vld [vmem:[%s1548_s1 + $0x10] sm:$0xff] }
   0x7   :  { %v60_v20 = vld [vmem:[%s1550_s6 + $0x8] sm:$0xff]  ;;  %v62_v22 = vld [vmem:[%s1551_s8] sm:$0xf] }
   0x8   :  { %926 = vmatmul.msk.bf16.vlgmr.msra.gmra.mxu0 %vm125_vm1, %v960_v6  ;;  %929 = vmatmul.msk.bf16.vlgmr.msra.gmra.mxu3 %vm125_vm1, %v963_v7 }
   0xa   :  { %102 = vperm.xlu0 %969, %v48_v8  }
   0xb   :  { %92 = vperm.xlu1 %970, %v46_v9  }
   0xc   :  { %82 = vperm.xlu2 %971, %v44_v11  }
  0x12   :  { %67 = vperm.xlu0 %969, %v41_v12  }
  0x13   :  { %72 = vperm.xlu1 %970, %v42_v13  }
  0x14   :  { %539 = vperm.xlu2 %971, %v55_v15  }
  0x18   :  { %927 = vmatmul.msk.bf16.gmra.mxu0 %vm125_vm1, %v961_v14 }
  0x1a   :  { %544 = vperm.xlu0 %969, %v56_v16  }
  0x1b   :  { %529 = vperm.xlu1 %970, %v53_v17  }
  0x1c   :  { %534 = vperm.xlu2 %971, %v54_v18  }
  0x22   :  { %763 = vperm.xlu0 %969, %v59_v19  }
  0x23   :  { %768 = vperm.xlu1 %970, %v60_v20  }
  0x24   :  { %885 = vperm.xlu2 %971, %v62_v22  }
  0x28   :  { %928 = vmatmul.msk.bf16.gmra.mxu0 %vm125_vm1, %v962_v21 }
  0x5e   :  { %v78_v44 = vpop.permute.xlu2 %77 }
  0x66   :  { %v83_v7 = vpop.permute.xlu2 %82 }
  0x74   :  { %v98_v23 = vpop.permute.xlu0 %97 }
  0x75   :  { %v1115_v25 = vpop.permute.xlu1 %87 }
  0x7c   :  { %v103_v24 = vpop.permute.xlu0 %102 }
  0x7d   :  { %v1119_v30 = vpop.permute.xlu1 %92 }
  0x84   :  { %v68_v27 = vpop.permute.xlu0 %67 }
  0x85   :  { %v151_v26 = vpop.f32.mrf.mxu0  ;;  %v73_v46 = vpop.permute.xlu1 %72 }
  0x86   :  { %v1117_v28 = vadd.f32 %v151_v26, %v68_v27 }
  0x88   :  { %v1124_v33 = vmul.f32 0.70710677, %v1117_v28 }
  0x8a   :  { %v187_v36 = vmul.f32 %v1124_v33, %v1124_v33 }
  0x8b   :  { %v166_v29 = vpop.f32.mrf.mxu3 }
  0x8c   :  { %v1121_v31 = vadd.f32 %v166_v29, %v98_v23  ;;  %v1139_v43 = vmin.f32 %v187_v36, 16.0 }
  0x8d   :  { %v153_v32 = vpop.f32.mrf.mxu0 }
  0x8e   :  { %v1127_v34 = vmul.f32 0.70710677, %v1121_v31  ;;  %v1146_v50 = vadd.f32 %v153_v32, %v73_v46  ;;  %v200_v55 = vmul.f32 3.8918573e-05, %v1139_v43  ;;  %v189_v59 = vmul.f32 2.1237322e-06, %v1139_v43 }
  0x90   :  { %v427_v35 = vmul.f32 %v1127_v34, %v1127_v34  ;;  %v1162_v60 = vmul.f32 0.70710677, %v1146_v50  ;;  %v201_v3 = vadd.f32 0.001143296, %v200_v55  ;;  %v190_v12 = vadd.f32 0.00028619796, %v189_v59 }
  0x92   :  { %v1133_v37 = vmin.f32 %v427_v35, 16.0  ;;  %v227_v8 = vmul.f32 %v1162_v60, %v1162_v60  ;;  %v202_v17 = vmul.f32 %v201_v3, %v1139_v43 }
  0x93   :  { %v168_v38 = vpop.f32.mrf.mxu3 }
  0x94   :  { %v429_v39 = vmul.f32 2.1237322e-06, %v1133_v37  ;;  %v1136_v40 = vadd.f32 %v168_v38, %v103_v24  ;;  %v440_v42 = vmul.f32 3.8918573e-05, %v1133_v37  ;;  %v1179_v19 = vmin.f32 %v227_v8, 16.0 }
  0x95   :  { %v156_v41 = vpop.f32.mrf.mxu0  ;;  %v191_v24 = vmul.f32 %v190_v12, %v1139_v43  ;;  %v203_v35 = vadd.f32 0.014752088, %v202_v17 }
  0x96   :  { %v430_v45 = vadd.f32 0.00028619796, %v429_v39  ;;  %v1142_v47 = vmul.f32 0.70710677, %v1136_v40  ;;  %v1144_v48 = vadd.f32 %v156_v41, %v78_v44  ;;  %v441_v49 = vadd.f32 0.001143296, %v440_v42 }
  0x97   :  { %v229_v41 = vmul.f32 2.1237322e-06, %v1179_v19  ;;  %v192_v44 = vadd.f32 0.0036580483, %v191_v24  ;;  %v1226_v8 = vmul.f32 0.5, %v1136_v40 }
  0x98   :  { %v467_v51 = vmul.f32 %v1142_v47, %v1142_v47  ;;  %v1151_v52 = vmul.f32 0.70710677, %v1144_v48  ;;  %v442_v53 = vmul.f32 %v441_v49, %v1133_v37  ;;  %v431_v54 = vmul.f32 %v430_v45, %v1133_v37 }
  0x9a   :  { %v1156_v56 = vmin.f32 %v467_v51, 16.0  ;;  %v267_v57 = vmul.f32 %v1151_v52, %v1151_v52  ;;  %v443_v58 = vadd.f32 0.014752088, %v442_v53  ;;  %v432_v1 = vadd.f32 0.0036580483, %v431_v54 }
  0x9b   :  { %v1205_v51 = vmul.f32 0.5, %v1121_v31 }
  0x9c   :  { %v469_v61 = vmul.f32 2.1237322e-06, %v1156_v56  ;;  %v1165_v62 = vmin.f32 %v267_v57, 16.0  ;;  %v444_v0 = vmul.f32 %v443_v58, %v1133_v37  ;;  %v480_v2 = vmul.f32 3.8918573e-05, %v1156_v56 }
  0x9d   :  { %v158_v63 = vpop.f32.mrf.mxu0  ;;  %v433_v14 = vmul.f32 %v432_v1, %v1133_v37  ;;  %v230_v57 = vadd.f32 0.00028619796, %v229_v41 }
  0x9e   :  { %v470_v4 = vadd.f32 0.00028619796, %v469_v61  ;;  %v269_v5 = vmul.f32 2.1237322e-06, %v1165_v62  ;;  %v445_v6 = vadd.f32 0.112945676, %v444_v0  ;;  %v1173_v10 = vadd.f32 %v158_v63, %v83_v7 }
  0x9f   :  { %v481_v13 = vadd.f32 0.001143296, %v480_v2  ;;  %v434_v27 = vadd.f32 0.05243302, %v433_v14  ;;  %v280_v39 = vmul.f32 3.8918573e-05, %v1165_v62  ;;  %v204_v63 = vmul.f32 %v203_v35, %v1139_v43 }
  0xa0   :  { %v471_v9 = vmul.f32 %v470_v4, %v1156_v56  ;;  %v446_v11 = vmul.f32 %v445_v6, %v1133_v37  ;;  %v270_v15 = vadd.f32 0.00028619796, %v269_v5  ;;  %v1182_v21 = vmul.f32 0.70710677, %v1173_v10 }
  0xa1   :  { %v482_v18 = vmul.f32 %v481_v13, %v1156_v56  ;;  %v435_v46 = vmul.f32 %v434_v27, %v1133_v37  ;;  %v281_v55 = vadd.f32 0.001143296, %v280_v39  ;;  %v1214_v0 = vmul.f32 %v192_v44, %v1139_v43 }
  0xa2   :  { %v447_v16 = vadd.f32 0.4994258, %v446_v11  ;;  %v472_v20 = vadd.f32 0.0036580483, %v471_v9  ;;  %v271_v29 = vmul.f32 %v270_v15, %v1165_v62  ;;  %v231_v12 = vmul.f32 %v230_v57, %v1179_v19 }
  0xa3   :  { %v483_v38 = vadd.f32 0.014752088, %v482_v18  ;;  %v436_v4 = vadd.f32 0.18741608, %v435_v46  ;;  %v282_v7 = vmul.f32 %v281_v55, %v1165_v62  ;;  %v205_v15 = vadd.f32 0.112945676, %v204_v63 }
  0xa4   :  { %v448_v23 = vmul.f32 %v447_v16, %v1133_v37  ;;  %v473_v42 = vmul.f32 %v472_v20, %v1156_v56  ;;  %v272_v49 = vadd.f32 0.0036580483, %v271_v29 }
  0xa5   :  { %v161_v22 = vpop.f32.mrf.mxu0  ;;  %v484_v54 = vmul.f32 %v483_v38, %v1156_v56  ;;  %v437_v20 = vmul.f32 %v436_v4, %v1133_v37  ;;  %v283_v24 = vadd.f32 0.014752088, %v282_v7 }
  0xa6   :  { %v1187_v26 = vadd.f32 %v161_v22, %v1115_v25  ;;  %v1190_v32 = vadd.f32 1.0, %v448_v23  ;;  %v307_v25 = vmul.f32 %v1182_v21, %v1182_v21  ;;  %v474_v58 = vadd.f32 0.05243302, %v473_v42 }
  0xa7   :  { %v485_v2 = vadd.f32 0.112945676, %v484_v54  ;;  %v273_v5 = vmul.f32 %v272_v49, %v1165_v62  ;;  %v284_v42 = vmul.f32 %v283_v24, %v1165_v62 }
  0xa8   :  { %v1193_v36 = vmul.f32 0.70710677, %v1187_v26  ;;  %972 = vrcp.f32 %v1190_v32  ;;  %v1210_v59 = vmin.f32 %v307_v25, 16.0  ;;  %v475_v13 = vmul.f32 %v474_v58, %v1156_v56 }
  0xa9   :  { %v486_v18 = vmul.f32 %v485_v2, %v1156_v56  ;;  %v274_v22 = vadd.f32 0.05243302, %v273_v5  ;;  %vm455_vm2 = vweird.f32 %v1190_v32  ;;  %v459_v37 = vand.u32 2147483647, %v1190_v32 }
  0xaa   :  { %v347_v45 = vmul.f32 %v1193_v36, %v1193_v36  ;;  %v309_v14 = vmul.f32 2.1237322e-06, %v1210_v59  ;;  %v476_v25 = vadd.f32 0.18741608, %v475_v13  ;;  %v461_v58 = vand.u32 2147483648, %v1190_v32 }
  0xab   :  { %v487_v38 = vadd.f32 0.4994258, %v486_v18  ;;  %v285_v4 = vadd.f32 0.112945676, %v284_v42  ;;  %v438_v5 = vadd.f32 1.1283791, %v437_v20  ;;  %v275_v13 = vmul.f32 %v274_v22, %v1165_v62 }
  0xac   :  { %v1207_v53 = vmin.f32 %v347_v45, 16.0  ;;  %v310_v39 = vadd.f32 0.00028619796, %v309_v14  ;;  %vm460_vm5 = vcmp.eq.f32.partialorder %v459_v37, 8.507059e+37 }
  0xad   :  { %v163_v61 = vpop.f32.mrf.mxu0  ;;  %v488_v45 = vmul.f32 %v487_v38, %v1156_v56 }
  0xae   :  { %v349_v1 = vmul.f32 2.1237322e-06, %v1207_v53  ;;  %v1218_v31 = vadd.f32 %v163_v61, %v1119_v30  ;;  %v1220_v3 = vpop.eup %972  ;;  %v360_v6 = vmul.f32 3.8918573e-05, %v1207_v53  ;;  %v311_v63 = vmul.f32 %v310_v39, %v1210_v59 }
  0xaf   :  { %v451_v30 = vmul.f32 %v1220_v3, %v1190_v32  ;;  %vm456_vm3 = vweird.f32 %v1220_v3  ;;  %v1255_v61 = vadd.f32 1.0, %v488_v45 }
  0xb0   :  { %v350_v9 = vadd.f32 0.00028619796, %v349_v1  ;;  %v1229_v11 = vmul.f32 0.70710677, %v1218_v31  ;;  %v361_v23 = vadd.f32 0.001143296, %v360_v6  ;;  %vm1264_vm4 = vmor %vm455_vm2, %vm456_vm3 }
  0xb1   :  { %v452_v17 = vsub.f32 1.0, %v451_v30  ;;  %v1259_v6 = vadd.f32 0.0036580483, %v231_v12  ;;  %974 = vrcp.f32 %v1255_v61  ;;  %v477_v30 = vmul.f32 %v476_v25, %v1156_v56 }
  0xb2   :  { %v351_v16 = vmul.f32 %v350_v9, %v1207_v53  ;;  %v387_v40 = vmul.f32 %v1229_v11, %v1229_v11  ;;  %v362_v41 = vmul.f32 %v361_v23, %v1207_v53  ;;  %v320_v12 = vmul.f32 3.8918573e-05, %v1210_v59 }
  0xb3   :  { %v453_v35 = vmul.f32 %v1220_v3, %v452_v17  ;;  %v462_v17 = vor.u32 1.1754944e-38, %v461_v58  ;;  %v312_v18 = vadd.f32 0.0036580483, %v311_v63  ;;  %v286_v23 = vmul.f32 %v285_v4, %v1165_v62 }
  0xb4   :  { %v352_v27 = vadd.f32 0.0036580483, %v351_v16  ;;  %v1241_v29 = vmin.f32 %v387_v40, 16.0  ;;  %v363_v49 = vadd.f32 0.014752088, %v362_v41  ;;  %v439_v56 = vmul.f32 %v438_v5, %v1127_v34 }
  0xb5   :  { %v454_v46 = vadd.f32 %v1220_v3, %v453_v35  ;;  %v287_v38 = vadd.f32 0.4994258, %v286_v23  ;;  %v321_v39 = vadd.f32 0.001143296, %v320_v12  ;;  %v478_v42 = vadd.f32 1.1283791, %v477_v30 }
  0xb6   :  { %v389_v44 = vmul.f32 2.1237322e-06, %v1241_v29  ;;  %v400_v54 = vmul.f32 3.8918573e-05, %v1241_v29  ;;  %v353_v55 = vmul.f32 %v352_v27, %v1207_v53  ;;  %v364_v1 = vmul.f32 %v363_v49, %v1207_v53 }
  0xb7   :  { %v458_v14 = vsel %vm1264_vm4, %v1220_v3, %v454_v46  ;;  %v206_v27 = vmul.f32 %v205_v15, %v1139_v43  ;;  %v975_v41 = vpop.eup %974  ;;  %v276_v25 = vadd.f32 0.18741608, %v275_v13  ;;  %v313_v45 = vmul.f32 %v312_v18, %v1210_v59 }
  0xb8   :  { %v390_v57 = vadd.f32 0.00028619796, %v389_v44  ;;  %v401_v2 = vadd.f32 0.001143296, %v400_v54  ;;  %v354_v16 = vadd.f32 0.05243302, %v353_v55  ;;  %v463_v24 = vsel %vm460_vm5, %v462_v17, %v458_v14 }
  0xb9   :  { %v365_v20 = vadd.f32 0.112945676, %v364_v1  ;;  %v491_v34 = vmul.f32 %v975_v41, %v1255_v61  ;;  %v288_v15 = vmul.f32 %v287_v38, %v1165_v62  ;;  %v464_v49 = vmul.f32 %v463_v24, %v439_v56 }
  0xba   :  { %v391_v7 = vmul.f32 %v390_v57, %v1241_v29  ;;  %v402_v32 = vmul.f32 %v401_v2, %v1241_v29  ;;  %v355_v44 = vmul.f32 %v354_v16, %v1207_v53  ;;  %v499_v54 = vand.u32 2147483647, %v1255_v61 }
  0xbb   :  { %v366_v35 = vmul.f32 %v365_v20, %v1207_v53  ;;  %v322_v57 = vmul.f32 %v321_v39, %v1210_v59  ;;  %v492_v63 = vsub.f32 1.0, %v491_v34  ;;  %v1289_v2 = vadd.f32 1.0, %v288_v15 }
  0xbc   :  { %v392_v40 = vadd.f32 0.0036580483, %v391_v7  ;;  %v403_v22 = vadd.f32 0.014752088, %v402_v32  ;;  %v356_v4 = vadd.f32 0.18741608, %v355_v44  ;;  %vm496_vm6 = vweird.f32 %v975_v41 }
  0xbd   :  { %v367_v46 = vadd.f32 0.4994258, %v366_v35  ;;  %v501_v5 = vand.u32 2147483648, %v1255_v61  ;;  %v493_v9 = vmul.f32 %v975_v41, %v492_v63  ;;  %976 = vrcp.f32 %v1289_v2 }
  0xbe   :  { %v393_v3 = vmul.f32 %v392_v40, %v1241_v29  ;;  %v404_v37 = vmul.f32 %v403_v22, %v1241_v29  ;;  %v323_v13 = vadd.f32 0.014752088, %v322_v57  ;;  %v479_v14 = vmul.f32 %v478_v42, %v1142_v47 }
  0xbf   :  { %v368_v1 = vmul.f32 %v367_v46, %v1207_v53  ;;  %v936_v12 = vclamps-f32 %v464_v49, 1.0  ;;  %v207_v40 = vadd.f32 0.4994258, %v206_v27  ;;  %v494_v32 = vadd.f32 %v975_v41, %v493_v9 }
  0xc0   :  { %v405_v55 = vadd.f32 0.112945676, %v404_v37  ;;  %v394_v58 = vadd.f32 0.05243302, %v393_v3  ;;  %vm495_vm7 = vweird.f32 %v1255_v61  ;;  %v314_v18 = vadd.f32 0.05243302, %v313_v45 }
  0xc1   :  { %v1293_v30 = vadd.f32 1.0, %v368_v1  ;;  %v357_v20 = vmul.f32 %v356_v4, %v1207_v53  ;;  %vm497_vm8 = vmor %vm495_vm7, %vm496_vm6  ;;  %v502_v23 = vor.u32 1.1754944e-38, %v501_v5  ;;  %vm500_vm9 = vcmp.eq.f32.partialorder %v499_v54, 8.507059e+37 }
  0xc2   :  { %v406_v7 = vmul.f32 %v405_v55, %v1241_v29  ;;  %v395_v17 = vmul.f32 %v394_v58, %v1241_v29  ;;  %v498_v24 = vsel %vm497_vm8, %v975_v41, %v494_v32  ;;  %v324_v47 = vmul.f32 %v323_v13, %v1210_v59 }
  0xc3   :  { %978 = vrcp.f32 %v1293_v30  ;;  %v240_v22 = vmul.f32 3.8918573e-05, %v1179_v19  ;;  %v503_v27 = vsel %vm500_vm9, %v502_v23, %v498_v24  ;;  %v513_v3 = vadd.f32 1.0, %v936_v12  ;;  %v1308_v38 = vpop.eup %976 }
  0xc4   :  { %v407_v16 = vadd.f32 0.4994258, %v406_v7  ;;  %v208_v61 = vmul.f32 %v207_v40, %v1139_v43  ;;  %v1311_v53 = vadd.f32 0.05243302, %v1214_v0  ;;  %v396_v39 = vadd.f32 0.18741608, %v395_v17 }
  0xc5   :  { %v504_v42 = vmul.f32 %v503_v27, %v479_v14  ;;  %v325_v44 = vadd.f32 0.112945676, %v324_v47  ;;  %v1315_v41 = vmul.f32 %v1259_v6, %v1179_v19  ;;  %v277_v37 = vmul.f32 %v276_v25, %v1165_v62 }
  0xc6   :  { %v408_v56 = vmul.f32 %v407_v16, %v1241_v29  ;;  %v358_v45 = vadd.f32 1.1283791, %v357_v20  ;;  %v291_v15 = vmul.f32 %v1308_v38, %v1289_v2  ;;  %v241_v49 = vadd.f32 0.001143296, %v240_v22 }
  0xc7   :  { %v937_v46 = vclamps-f32 %v504_v42, 1.0  ;;  %v326_v0 = vmul.f32 %v325_v44, %v1210_v59  ;;  %v315_v54 = vmul.f32 %v314_v18, %v1210_v59  ;;  %v521_v55 = vmul.f32 %v513_v3, %v1205_v51 }
  0xc8   :  { %v1305_v35 = vadd.f32 1.0, %v408_v56  ;;  %v1325_v57 = vadd.f32 1.0, %v208_v61  ;;  %v397_v62 = vmul.f32 %v396_v39, %v1241_v29  ;;  %v292_v58 = vsub.f32 1.0, %v291_v15 }
  0xc9   :  { %v979_v34 = vpop.eup %978  ;;  %v514_v25 = vadd.f32 1.0, %v937_v46  ;;  %v327_v63 = vadd.f32 0.4994258, %v326_v0  ;;  %v359_v1 = vmul.f32 %v358_v45, %v1193_v36  ;;  %v379_v5 = vand.u32 2147483647, %v1293_v30 }
  0xca   :  { %980 = vrcp.f32 %v1305_v35  ;;  %v371_v6 = vmul.f32 %v979_v34, %v1293_v30  ;;  %v381_v7 = vand.u32 2147483648, %v1293_v30  ;;  %v301_v51 = vand.u32 2147483648, %v1289_v2 }
  0xcb   :  { %v522_v9 = vmul.f32 %v514_v25, %v1226_v8  ;;  %v328_v13 = vmul.f32 %v327_v63, %v1210_v59  ;;  %v242_v14 = vmul.f32 %v241_v49, %v1179_v19  ;;  %vm376_vm10 = vweird.f32 %v979_v34 }
  0xcc   :  { %v372_v4 = vsub.f32 1.0, %v371_v6  ;;  %v293_v16 = vmul.f32 %v1308_v38, %v292_v58  ;;  %982 = vrcp.f32 %v1325_v57  ;;  %v398_v36 = vadd.f32 1.1283791, %v397_v62 }
  0xcd   :  { %v526_v40 = vpack.c.bf16 %v522_v9, %v521_v55  ;;  %vm375_vm11 = vweird.f32 %v1293_v30  ;;  %vm380_vm12 = vcmp.eq.f32.partialorder %v379_v5, 8.507059e+37  ;;  %v382_v32 = vor.u32 1.1754944e-38, %v381_v7 }
  0xce   :  { %v373_v29 = vmul.f32 %v979_v34, %v372_v4  ;;  %v1339_v18 = vadd.f32 1.0, %v328_v13  ;;  %vm377_vm13 = vmor %vm375_vm11, %vm376_vm10  ;;  %v419_v23 = vand.u32 2147483647, %v1305_v35  ;;  %v421_v56 = vand.u32 2147483648, %v1305_v35 }
  0xcf   :  { %568 = vmatpush.bf16.msra.mxu1 %v526_v40  ;;  %v243_v24 = vadd.f32 0.014752088, %v242_v14  ;;  %v294_v22 = vadd.f32 %v1308_v38, %v293_v16  ;;  %vm296_vm14 = vweird.f32 %v1308_v38  ;;  %v278_v30 = vadd.f32 1.1283791, %v277_v37 }
  0xd0   :  { %v981_v12 = vpop.eup %980  ;;  %v374_v8 = vadd.f32 %v979_v34, %v373_v29  ;;  %984 = vrcp.f32 %v1339_v18  ;;  %v316_v39 = vadd.f32 0.18741608, %v315_v54  ;;  %vm295_vm0 = vweird.f32 %v1289_v2 }
  0xd1   :  { %v411_v17 = vmul.f32 %v981_v12, %v1305_v35  ;;  %vm416_vm15 = vweird.f32 %v981_v12  ;;  %v299_v44 = vand.u32 2147483647, %v1289_v2  ;;  %vm415_vm1 = vweird.f32 %v1305_v35  ;;  %vm1351_vm2 = vmor %vm295_vm0, %vm296_vm14 }
  0xd2   :  { %v378_v47 = vsel %vm377_vm13, %v979_v34, %v374_v8  ;;  %v1346_v61 = vpop.eup %982  ;;  %v302_v46 = vor.u32 1.1754944e-38, %v301_v51  ;;  %v244_v37 = vmul.f32 %v243_v24, %v1179_v19  ;;  %v399_v15 = vmul.f32 %v398_v36, %v1229_v11  ;;  %vm417_vm3 = vmor %vm415_vm1, %vm416_vm15 }
  0xd3   :  { %v412_v20 = vsub.f32 1.0, %v411_v17  ;;  %v383_v27 = vsel %vm380_vm12, %v382_v32, %v378_v47  ;;  %vm420_vm4 = vcmp.eq.f32.partialorder %v419_v23, 8.507059e+37  ;;  %v422_v0 = vor.u32 1.1754944e-38, %v421_v56 }
  0xd4   :  { %v384_v42 = vmul.f32 %v383_v27, %v359_v1  ;;  %v298_v49 = vsel %vm1351_vm2, %v1308_v38, %v294_v22  ;;  %v211_v35 = vmul.f32 %v1346_v61, %v1325_v57  ;;  %v245_v55 = vadd.f32 0.112945676, %v244_v37 }
  0xd5   :  { %v413_v3 = vmul.f32 %v981_v12, %v412_v20  ;;  %v195_v62 = vmul.f32 %v1311_v53, %v1139_v43  ;;  %v317_v25 = vmul.f32 %v316_v39, %v1210_v59  ;;  %vm300_vm5 = vcmp.eq.f32.partialorder %v299_v44, 8.507059e+37 }
  0xd6   :  { %v934_v2 = vclamps-f32 %v384_v42, 1.0  ;;  %v985_v6 = vpop.eup %984  ;;  %v234_v58 = vadd.f32 0.05243302, %v1315_v41  ;;  %v303_v1 = vsel %vm300_vm5, %v302_v46, %v298_v49  ;;  %v279_v4 = vmul.f32 %v278_v30, %v1151_v52 }
  0xd7   :  { %v414_v45 = vadd.f32 %v981_v12, %v413_v3  ;;  %v331_v38 = vmul.f32 %v985_v6, %v1339_v18  ;;  %v175_v5 = vmul.f32 0.5, %v1187_v26  ;;  %v176_v7 = vmul.f32 0.5, %v1218_v31 }
  0xd8   :  { %v246_v9 = vmul.f32 %v245_v55, %v1179_v19  ;;  %v511_v53 = vadd.f32 1.0, %v934_v2  ;;  %v212_v59 = vsub.f32 1.0, %v211_v35  ;;  %v318_v14 = vadd.f32 1.1283791, %v317_v25 }
  0xd9   :  { %v418_v54 = vsel %vm417_vm3, %v981_v12, %v414_v45  ;;  %v332_v13 = vsub.f32 1.0, %v331_v38  ;;  %v304_v12 = vmul.f32 %v303_v1, %v279_v4  ;;  %v341_v41 = vand.u32 2147483648, %v1339_v18 }
  0xda   :  { %v423_v11 = vsel %vm420_vm4, %v422_v0, %v418_v54  ;;  %v247_v29 = vadd.f32 0.4994258, %v246_v9  ;;  %vm336_vm6 = vweird.f32 %v985_v6  ;;  %v339_v52 = vand.u32 2147483647, %v1339_v18 }
  0xdb   :  { %v424_v63 = vmul.f32 %v423_v11, %v399_v15  ;;  %v333_v36 = vmul.f32 %v985_v6, %v332_v13  ;;  %v196_v40 = vadd.f32 0.18741608, %v195_v62  ;;  %vm335_vm7 = vweird.f32 %v1339_v18 }
  0xdc   :  { %v248_v26 = vmul.f32 %v247_v29, %v1179_v19  ;;  %v519_v31 = vmul.f32 %v511_v53, %v175_v5  ;;  %v213_v32 = vmul.f32 %v1346_v61, %v212_v59  ;;  %v235_v20 = vmul.f32 %v234_v58, %v1179_v19  ;;  %vm337_vm8 = vmor %vm335_vm7, %vm336_vm6  ;;  %v964_v29 = vld [vmem:[%s1552_s3] sm:$0xff] }
  0xdd   :  { %v935_v51 = vclamps-f32 %v424_v63, 1.0  ;;  %v334_v8 = vadd.f32 %v985_v6, %v333_v36  ;;  %v319_v23 = vmul.f32 %v318_v14, %v1182_v21  ;;  %v342_v56 = vor.u32 1.1754944e-38, %v341_v41  ;;  %v530_v36 = vpop.permute.xlu1 %529 }
  0xde   :  { %v249_v24 = vadd.f32 1.0, %v248_v26  ;;  %v932_v22 = vclamps-f32 %v304_v12, 1.0  ;;  %vm340_vm9 = vcmp.eq.f32.partialorder %v339_v52, 8.507059e+37  ;;  %v197_v18 = vmul.f32 %v196_v40, %v1139_v43 }
  0xdf   :  { %v512_v16 = vadd.f32 1.0, %v935_v51  ;;  %v338_v30 = vsel %vm337_vm8, %v985_v6, %v334_v8  ;;  %v214_v39 = vadd.f32 %v1346_v61, %v213_v32  ;;  %vm216_vm10 = vweird.f32 %v1346_v61 }
  0xe0   :  { %v343_v27 = vsel %vm340_vm9, %v342_v56, %v338_v30  ;;  %986 = vrcp.f32 %v249_v24  ;;  %v236_v42 = vadd.f32 0.18741608, %v235_v20  ;;  %v221_v21 = vand.u32 2147483648, %v1325_v57 }
  0xe1   :  { %v520_v17 = vmul.f32 %v512_v16, %v176_v7  ;;  %v344_v3 = vmul.f32 %v343_v27, %v319_v23  ;;  %v509_v45 = vadd.f32 1.0, %v932_v22  ;;  %vm215_vm11 = vweird.f32 %v1325_v57  ;;  %v540_v16 = vpop.permute.xlu2 %539 }
  0xe2   :  { %v219_v34 = vand.u32 2147483647, %v1325_v57  ;;  %v173_v46 = vmul.f32 0.5, %v1144_v48  ;;  %vm217_vm12 = vmor %vm215_vm11, %vm216_vm10  ;;  %v198_v37 = vadd.f32 1.1283791, %v197_v18  ;;  %v174_v43 = vmul.f32 0.5, %v1173_v10 }
  0xe3   :  { %v525_v47 = vpack.c.bf16 %v520_v17, %v519_v31  ;;  %v933_v44 = vclamps-f32 %v344_v3, 1.0  ;;  %v218_v0 = vsel %vm217_vm12, %v1346_v61, %v214_v39  ;;  %v237_v2 = vmul.f32 %v236_v42, %v1179_v19 }
  0xe4   :  { %v222_v54 = vor.u32 1.1754944e-38, %v221_v21  ;;  %v517_v35 = vmul.f32 %v509_v45, %v173_v46  ;;  %vm220_vm13 = vcmp.eq.f32.partialorder %v219_v34, 8.507059e+37  ;;  %v199_v57 = vmul.f32 %v198_v37, %v1124_v33  ;;  %v545_v45 = vpop.permute.xlu0 %544 }
  0xe5   :  { %569 = vmatpush.bf16.msra.mxu1 %v525_v47  ;;  %v510_v15 = vadd.f32 1.0, %v933_v44  ;;  %v238_v11 = vadd.f32 1.1283791, %v237_v2  ;;  %v261_v58 = vand.u32 2147483648, %v249_v24  ;;  %v259_v61 = vand.u32 2147483647, %v249_v24 }
  0xe6   :  { %v987_v49 = vpop.eup %986  ;;  %v223_v62 = vsel %vm220_vm13, %v222_v54, %v218_v0  ;;  %vm255_vm15 = vweird.f32 %v249_v24  ;;  %v171_v53 = vmul.f32 0.5, %v1117_v28  ;;  %v172_v13 = vmul.f32 0.5, %v1146_v50 }
  0xe7   :  { %v518_v55 = vmul.f32 %v510_v15, %v174_v43  ;;  %v251_v6 = vmul.f32 %v987_v49, %v249_v24  ;;  %v224_v10 = vmul.f32 %v223_v62, %v199_v57  ;;  %vm256_vm14 = vweird.f32 %v987_v49 }
  0xe8   :  { %vm257_vm0 = vmor %vm255_vm15, %vm256_vm14  ;;  %v262_v19 = vor.u32 1.1754944e-38, %v261_v58  ;;  %v239_v38 = vmul.f32 %v238_v11, %v1162_v60  ;;  %vm260_vm1 = vcmp.eq.f32.partialorder %v259_v61, 8.507059e+37  ;;  %vm557_vm2 = vcmask 523264   ;;  %v965_v60 = vld [vmem:[%s1552_s3 + $0x8] sm:$0xff] }
  0xe9   :  { %v524_v25 = vpack.c.bf16 %v518_v55, %v517_v35  ;;  %v252_v48 = vsub.f32 1.0, %v251_v6  ;;  %v930_v4 = vclamps-f32 %v224_v10, 1.0  ;;  %v535_v40 = vpop.permute.xlu2 %534 }
  0xeb   :  { %570 = vmatpush.bf16.msra.mxu1 %v524_v25  ;;  %v253_v63 = vmul.f32 %v987_v49, %v252_v48  ;;  %v507_v51 = vadd.f32 1.0, %v930_v4 }
  0xed   :  { %v254_v1 = vadd.f32 %v987_v49, %v253_v63  ;;  %v515_v14 = vmul.f32 %v507_v51, %v171_v53 }
  0xef   :  { %v258_v5 = vsel %vm257_vm0, %v987_v49, %v254_v1 }
  0xf0   :  { %v263_v7 = vsel %vm260_vm1, %v262_v19, %v258_v5 }
  0xf1   :  { %v264_v33 = vmul.f32 %v263_v7, %v239_v38 }
  0xf3   :  { %v931_v9 = vclamps-f32 %v264_v33, 1.0 }
  0xf5   :  { %v508_v59 = vadd.f32 1.0, %v931_v9 }
  0xf7   :  { %v516_v12 = vmul.f32 %v508_v59, %v172_v13 }
  0xf9   :  { %v523_v41 = vpack.c.bf16 %v516_v12, %v515_v14 }
  0xfb   :  { %571 = vmatpush.bf16.msra.mxu1 %v523_v41 }
  0xfe   :  { %946 = vmatmul.msk.bf16.vlgmr.msra.gmra.mxu1 %vm557_vm2, %v964_v29 }
 0x10e   :  { %947 = vmatmul.msk.bf16.gmra.mxu1 %vm557_vm2, %v965_v60 }
 0x17b   :  { %v573_v28 = vpop.f32.mrf.mxu1 }
 0x17c   :  { %v1398_v50 = vadd.f32 %v573_v28, %v530_v36 }
 0x17e   :  { %v1401_v52 = vmul.f32 0.70710677, %v1398_v50 }
 0x180   :  { %v591_v17 = vmul.f32 %v1401_v52, %v1401_v52 }
 0x182   :  { %v1412_v20 = vmin.f32 %v591_v17, 16.0 }
 0x183   :  { %v575_v26 = vpop.f32.mrf.mxu1 }
 0x184   :  { %v1403_v31 = vadd.f32 %v575_v26, %v535_v40  ;;  %v604_v22 = vmul.f32 3.8918573e-05, %v1412_v20  ;;  %v593_v30 = vmul.f32 2.1237322e-06, %v1412_v20 }
 0x186   :  { %v1408_v8 = vmul.f32 0.70710677, %v1403_v31  ;;  %v605_v3 = vadd.f32 0.001143296, %v604_v22  ;;  %v594_v21 = vadd.f32 0.00028619796, %v593_v30 }
 0x188   :  { %v631_v32 = vmul.f32 %v1408_v8, %v1408_v8  ;;  %v606_v42 = vmul.f32 %v605_v3, %v1412_v20  ;;  %v595_v54 = vmul.f32 %v594_v21, %v1412_v20 }
 0x18a   :  { %v1414_v23 = vmin.f32 %v631_v32, 16.0  ;;  %v607_v37 = vadd.f32 0.014752088, %v606_v42  ;;  %v596_v10 = vadd.f32 0.0036580483, %v595_v54 }
 0x18b   :  { %v578_v56 = vpop.f32.mrf.mxu1 }
 0x18c   :  { %v633_v24 = vmul.f32 2.1237322e-06, %v1414_v23  ;;  %v1417_v47 = vadd.f32 %v578_v56, %v540_v16  ;;  %v608_v49 = vmul.f32 %v607_v37, %v1412_v20  ;;  %v644_v2 = vmul.f32 3.8918573e-05, %v1414_v23 }
 0x18d   :  { %v597_v53 = vmul.f32 %v596_v10, %v1412_v20 }
 0x18e   :  { %v634_v27 = vadd.f32 0.00028619796, %v633_v24  ;;  %v1422_v18 = vmul.f32 0.70710677, %v1417_v47  ;;  %v609_v57 = vadd.f32 0.112945676, %v608_v49 }
 0x18f   :  { %v645_v25 = vadd.f32 0.001143296, %v644_v2  ;;  %v598_v26 = vadd.f32 0.05243302, %v597_v53 }
 0x190   :  { %v671_v39 = vmul.f32 %v1422_v18, %v1422_v18  ;;  %v635_v44 = vmul.f32 %v634_v27, %v1414_v23  ;;  %v610_v63 = vmul.f32 %v609_v57, %v1412_v20 }
 0x191   :  { %v646_v61 = vmul.f32 %v645_v25, %v1414_v23  ;;  %v599_v42 = vmul.f32 %v598_v26, %v1412_v20 }
 0x192   :  { %v1428_v34 = vmin.f32 %v671_v39, 16.0  ;;  %v636_v35 = vadd.f32 0.0036580483, %v635_v44  ;;  %v611_v4 = vadd.f32 0.4994258, %v610_v63 }
 0x193   :  { %v580_v46 = vpop.f32.mrf.mxu1  ;;  %v647_v5 = vadd.f32 0.014752088, %v646_v61  ;;  %v600_v2 = vadd.f32 0.18741608, %v599_v42 }
 0x194   :  { %v1430_v43 = vadd.f32 %v580_v46, %v545_v45  ;;  %v673_v15 = vmul.f32 2.1237322e-06, %v1428_v34  ;;  %v684_v0 = vmul.f32 3.8918573e-05, %v1428_v34  ;;  %v637_v1 = vmul.f32 %v636_v35, %v1414_v23 }
 0x195   :  { %v612_v13 = vmul.f32 %v611_v4, %v1412_v20  ;;  %v648_v59 = vmul.f32 %v647_v5, %v1414_v23 }
 0x196   :  { %v674_v55 = vadd.f32 0.00028619796, %v673_v15  ;;  %v1438_v6 = vmul.f32 0.70710677, %v1430_v43  ;;  %v685_v62 = vadd.f32 0.001143296, %v684_v0 }
 0x197   :  { %v638_v14 = vadd.f32 0.05243302, %v637_v1  ;;  %v1455_v60 = vadd.f32 1.0, %v612_v13  ;;  %v649_v16 = vadd.f32 0.112945676, %v648_v59 }
 0x198   :  { %v675_v48 = vmul.f32 %v674_v55, %v1428_v34  ;;  %v711_v11 = vmul.f32 %v1438_v6, %v1438_v6  ;;  %v686_v58 = vmul.f32 %v685_v62, %v1428_v34 }
 0x199   :  { %988 = vrcp.f32 %v1455_v60  ;;  %v639_v32 = vmul.f32 %v638_v14, %v1414_v23  ;;  %v650_v22 = vmul.f32 %v649_v16, %v1414_v23  ;;  %v623_v59 = vand.u32 2147483647, %v1455_v60 }
 0x19a   :  { %v1447_v19 = vmin.f32 %v711_v11, 16.0  ;;  %v687_v38 = vadd.f32 0.014752088, %v686_v58  ;;  %v676_v7 = vadd.f32 0.0036580483, %v675_v48  ;;  %v601_v11 = vmul.f32 %v600_v2, %v1412_v20 }
 0x19b   :  { %v651_v39 = vadd.f32 0.4994258, %v650_v22  ;;  %v640_v44 = vadd.f32 0.18741608, %v639_v32  ;;  %vm619_vm4 = vweird.f32 %v1455_v60  ;;  %vm1492_vm10 = vcmp.eq.f32.partialorder %v623_v59, 8.507059e+37 }
 0x19c   :  { %v713_v33 = vmul.f32 2.1237322e-06, %v1447_v19  ;;  %v688_v9 = vmul.f32 %v687_v38, %v1428_v34  ;;  %v724_v51 = vmul.f32 3.8918573e-05, %v1447_v19  ;;  %v677_v28 = vmul.f32 %v676_v7, %v1428_v34 }
 0x19d   :  { %v652_v37 = vmul.f32 %v651_v39, %v1414_v23  ;;  %v641_v35 = vmul.f32 %v640_v44, %v1414_v23  ;;  %v602_v5 = vadd.f32 1.1283791, %v601_v11 }
 0x19e   :  { %v714_v12 = vadd.f32 0.00028619796, %v713_v33  ;;  %v689_v41 = vadd.f32 0.112945676, %v688_v9  ;;  %v725_v29 = vadd.f32 0.001143296, %v724_v51 }
 0x19f   :  { %v678_v27 = vadd.f32 0.05243302, %v677_v28  ;;  %v1469_v15 = vpop.eup %988  ;;  %v653_v57 = vadd.f32 1.0, %v652_v37  ;;  %v642_v63 = vadd.f32 1.1283791, %v641_v35 }
 0x1a0   :  { %v715_v36 = vmul.f32 %v714_v12, %v1447_v19  ;;  %v690_v40 = vmul.f32 %v689_v41, %v1428_v34  ;;  %v726_v17 = vmul.f32 %v725_v29, %v1447_v19  ;;  %v615_v62 = vmul.f32 %v1469_v15, %v1455_v60 }
 0x1a1   :  { %v679_v49 = vmul.f32 %v678_v27, %v1428_v34  ;;  %v643_v9 = vmul.f32 %v642_v63, %v1408_v8  ;;  %vm620_vm6 = vweird.f32 %v1469_v15  ;;  %vm659_vm12 = vweird.f32 %v653_v57 }
 0x1a2   :  { %v716_v56 = vadd.f32 0.0036580483, %v715_v36  ;;  %v691_v24 = vadd.f32 0.4994258, %v690_v40  ;;  %v727_v30 = vadd.f32 0.014752088, %v726_v17  ;;  %vm1501_vm11 = vmor %vm619_vm4, %vm620_vm6 }
 0x1a3   :  { %v680_v48 = vadd.f32 0.18741608, %v679_v49  ;;  %v616_v1 = vsub.f32 1.0, %v615_v62  ;;  %v665_v40 = vand.u32 2147483648, %v653_v57 }
 0x1a4   :  { %v692_v3 = vmul.f32 %v691_v24, %v1428_v34  ;;  %v728_v21 = vmul.f32 %v727_v30, %v1447_v19  ;;  %v717_v45 = vmul.f32 %v716_v56, %v1447_v19  ;;  %v663_v56 = vand.u32 2147483647, %v653_v57 }
 0x1a5   :  { %v681_v23 = vmul.f32 %v680_v48, %v1428_v34  ;;  %v617_v53 = vmul.f32 %v1469_v15, %v616_v1  ;;  %v625_v34 = vand.u32 2147483648, %v1455_v60 }
 0x1a6   :  { %v693_v46 = vadd.f32 1.0, %v692_v3  ;;  %v729_v0 = vadd.f32 0.112945676, %v728_v21  ;;  %v718_v55 = vadd.f32 0.05243302, %v717_v45  ;;  %v666_v45 = vor.u32 1.1754944e-38, %v665_v40 }
 0x1a7   :  { %v682_v12 = vadd.f32 1.1283791, %v681_v23  ;;  %v618_v36 = vadd.f32 %v1469_v15, %v617_v53  ;;  %v626_v30 = vor.u32 1.1754944e-38, %v625_v34  ;;  %vm664_vm14 = vcmp.eq.f32.partialorder %v663_v56, 8.507059e+37 }
 0x1a8   :  { %990 = vrcp.f32 %v693_v46  ;;  %v730_v54 = vmul.f32 %v729_v0, %v1447_v19  ;;  %v719_v61 = vmul.f32 %v718_v55, %v1447_v19  ;;  %v705_v51 = vand.u32 2147483648, %v693_v46 }
 0x1a9   :  { %992 = vrcp.f32 %v653_v57  ;;  %v703_v41 = vand.u32 2147483647, %v693_v46  ;;  %vm699_vm5 = vweird.f32 %v693_v46  ;;  %v622_v44 = vsel %vm1501_vm11, %v1469_v15, %v618_v36 }
 0x1aa   :  { %v731_v25 = vadd.f32 0.4994258, %v730_v54  ;;  %v720_v20 = vadd.f32 0.18741608, %v719_v61  ;;  %v706_v28 = vor.u32 1.1754944e-38, %v705_v51  ;;  %v627_v2 = vsel %vm1492_vm10, %v626_v30, %v622_v44 }
 0x1ab   :  { %vm704_vm9 = vcmp.eq.f32.partialorder %v703_v41, 8.507059e+37  ;;  %v603_v54 = vmul.f32 %v602_v5, %v1401_v52  ;;  %v585_v52 = vmul.f32 0.5, %v1417_v47  ;;  %v966_v47 = vld [vmem:[%s1553_s5] sm:$0xff]  ;;  %v769_v41 = vpop.permute.xlu1 %768 }
 0x1ac   :  { %v732_v58 = vmul.f32 %v731_v25, %v1447_v19  ;;  %v721_v16 = vmul.f32 %v720_v20, %v1447_v19  ;;  %v683_v19 = vmul.f32 %v682_v12, %v1422_v18 }
 0x1ad   :  { %v628_v48 = vmul.f32 %v627_v2, %v603_v54 }
 0x1ae   :  { %v991_v10 = vpop.eup %990  ;;  %v1479_v4 = vadd.f32 1.0, %v732_v58  ;;  %v722_v42 = vadd.f32 1.1283791, %v721_v16 }
 0x1af   :  { %v695_v38 = vmul.f32 %v991_v10, %v693_v46  ;;  %v993_v33 = vpop.eup %992  ;;  %vm700_vm3 = vweird.f32 %v991_v10  ;;  %v948_v1 = vclamps-f32 %v628_v48, 1.0 }
 0x1b0   :  { %994 = vrcp.f32 %v1479_v4  ;;  %v655_v14 = vmul.f32 %v993_v33, %v653_v57  ;;  %vm701_vm7 = vmor %vm699_vm5, %vm700_vm3  ;;  %vm660_vm8 = vweird.f32 %v993_v33  ;;  %v743_v18 = vand.u32 2147483647, %v1479_v4 }
 0x1b1   :  { %v696_v7 = vsub.f32 1.0, %v695_v38  ;;  %vm661_vm13 = vmor %vm659_vm12, %vm660_vm8  ;;  %v745_v46 = vand.u32 2147483648, %v1479_v4  ;;  %vm739_vm0 = vweird.f32 %v1479_v4  ;;  %v723_v55 = vmul.f32 %v722_v42, %v1438_v6 }
 0x1b2   :  { %v656_v8 = vsub.f32 1.0, %v655_v14  ;;  %vm744_vm2 = vcmp.eq.f32.partialorder %v743_v18, 8.507059e+37  ;;  %v586_v38 = vmul.f32 0.5, %v1430_v43  ;;  %v584_v6 = vmul.f32 0.5, %v1403_v31  ;;  %v764_v43 = vpop.permute.xlu0 %763 }
 0x1b3   :  { %v697_v13 = vmul.f32 %v991_v10, %v696_v7  ;;  %v746_v62 = vor.u32 1.1754944e-38, %v745_v46  ;;  %vm776_vm3 = vcmask 261120   ;;  %vm888_vm12 = vcmask 130048  }
 0x1b4   :  { %v657_v32 = vmul.f32 %v993_v33, %v656_v8 }
 0x1b5   :  { %v698_v29 = vadd.f32 %v991_v10, %v697_v13 }
 0x1b6   :  { %v995_v26 = vpop.eup %994  ;;  %v658_v39 = vadd.f32 %v993_v33, %v657_v32 }
 0x1b7   :  { %v702_v17 = vsel %vm701_vm7, %v991_v10, %v698_v29  ;;  %v735_v24 = vmul.f32 %v995_v26, %v1479_v4  ;;  %vm740_vm15 = vweird.f32 %v995_v26 }
 0x1b8   :  { %v707_v27 = vsel %vm704_vm9, %v706_v28, %v702_v17  ;;  %v662_v37 = vsel %vm661_vm13, %v993_v33, %v658_v39  ;;  %vm741_vm1 = vmor %vm739_vm0, %vm740_vm15  ;;  %v751_v33 = vadd.f32 1.0, %v948_v1 }
 0x1b9   :  { %v736_v21 = vsub.f32 1.0, %v735_v24  ;;  %v708_v60 = vmul.f32 %v707_v27, %v683_v19  ;;  %v667_v49 = vsel %vm664_vm14, %v666_v45, %v662_v37 }
 0x1ba   :  { %v668_v15 = vmul.f32 %v667_v49, %v643_v9  ;;  %v583_v9 = vmul.f32 0.5, %v1398_v50 }
 0x1bb   :  { %v737_v0 = vmul.f32 %v995_v26, %v736_v21  ;;  %v950_v57 = vclamps-f32 %v708_v60, 1.0 }
 0x1bc   :  { %v949_v10 = vclamps-f32 %v668_v15, 1.0  ;;  %v755_v53 = vmul.f32 %v751_v33, %v583_v9 }
 0x1bd   :  { %v738_v35 = vadd.f32 %v995_v26, %v737_v0  ;;  %v753_v61 = vadd.f32 1.0, %v950_v57 }
 0x1be   :  { %v752_v23 = vadd.f32 1.0, %v949_v10 }
 0x1bf   :  { %v742_v25 = vsel %vm741_vm1, %v995_v26, %v738_v35  ;;  %v757_v5 = vmul.f32 %v753_v61, %v585_v52 }
 0x1c0   :  { %v747_v11 = vsel %vm744_vm2, %v746_v62, %v742_v25  ;;  %v756_v51 = vmul.f32 %v752_v23, %v584_v6 }
 0x1c1   :  { %v748_v58 = vmul.f32 %v747_v11, %v723_v55 }
 0x1c2   :  { %v759_v13 = vpack.c.bf16 %v756_v51, %v755_v53 }
 0x1c3   :  { %v951_v63 = vclamps-f32 %v748_v58, 1.0 }
 0x1c5   :  { %v754_v4 = vadd.f32 1.0, %v951_v63 }
 0x1c7   :  { %v758_v7 = vmul.f32 %v754_v4, %v586_v38 }
 0x1c9   :  { %v760_v20 = vpack.c.bf16 %v758_v7, %v757_v5 }
 0x1cb   :  { %786 = vmatpush.bf16.msra.mxu2 %v760_v20 }
 0x1cf   :  { %787 = vmatpush.bf16.msra.mxu2 %v759_v13 }
 0x1d2   :  { %956 = vmatmul.msk.bf16.vlgmr.msra.gmra.mxu2 %vm776_vm3, %v966_v47 }
 0x255   :  { %v789_v59 = vpop.f32.mrf.mxu2 }
 0x256   :  { %v1522_v31 = vadd.f32 %v789_v59, %v764_v43 }
 0x258   :  { %v1525_v14 = vmul.f32 0.70710677, %v1522_v31 }
 0x25a   :  { %v798_v50 = vmul.f32 %v1525_v14, %v1525_v14 }
 0x25c   :  { %v799_v12 = vmin.f32 %v798_v50, 16.0 }
 0x25d   :  { %v791_v34 = vpop.f32.mrf.mxu2 }
 0x25e   :  { %v800_v29 = vmul.f32 2.1237322e-06, %v799_v12  ;;  %v1529_v8 = vadd.f32 %v791_v34, %v769_v41  ;;  %v811_v16 = vmul.f32 3.8918573e-05, %v799_v12 }
 0x260   :  { %v801_v28 = vadd.f32 0.00028619796, %v800_v29  ;;  %v1532_v36 = vmul.f32 0.70710677, %v1529_v8  ;;  %v812_v40 = vadd.f32 0.001143296, %v811_v16 }
 0x262   :  { %v838_v26 = vmul.f32 %v1532_v36, %v1532_v36  ;;  %v802_v17 = vmul.f32 %v801_v28, %v799_v12  ;;  %v813_v32 = vmul.f32 %v812_v40, %v799_v12 }
 0x264   :  { %v839_v56 = vmin.f32 %v838_v26, 16.0  ;;  %v814_v24 = vadd.f32 0.014752088, %v813_v32  ;;  %v803_v19 = vadd.f32 0.0036580483, %v802_v17 }
 0x266   :  { %v840_v22 = vmul.f32 2.1237322e-06, %v839_v56  ;;  %v851_v30 = vmul.f32 3.8918573e-05, %v839_v56  ;;  %v815_v27 = vmul.f32 %v814_v24, %v799_v12  ;;  %v804_v45 = vmul.f32 %v803_v19, %v799_v12 }
 0x267   :  { %v794_v24 = vmul.f32 0.5, %v1522_v31 }
 0x268   :  { %v841_v3 = vadd.f32 0.00028619796, %v840_v22  ;;  %v852_v39 = vadd.f32 0.001143296, %v851_v30  ;;  %v816_v42 = vadd.f32 0.112945676, %v815_v27 }
 0x269   :  { %v805_v49 = vadd.f32 0.05243302, %v804_v45  ;;  %v795_v22 = vmul.f32 0.5, %v1529_v8 }
 0x26a   :  { %v842_v21 = vmul.f32 %v841_v3, %v839_v56  ;;  %v853_v44 = vmul.f32 %v852_v39, %v839_v56  ;;  %v817_v18 = vmul.f32 %v816_v42, %v799_v12  ;;  %v886_v39 = vpop.permute.xlu2 %885 }
 0x26b   :  { %v806_v62 = vmul.f32 %v805_v49, %v799_v12 }
 0x26c   :  { %v843_v46 = vadd.f32 0.0036580483, %v842_v21  ;;  %v854_v37 = vadd.f32 0.014752088, %v853_v44  ;;  %v818_v60 = vadd.f32 0.4994258, %v817_v18 }
 0x26d   :  { %v807_v11 = vadd.f32 0.18741608, %v806_v62 }
 0x26e   :  { %v855_v0 = vmul.f32 %v854_v37, %v839_v56  ;;  %v819_v2 = vmul.f32 %v818_v60, %v799_v12  ;;  %v844_v54 = vmul.f32 %v843_v46, %v839_v56 }
 0x26f   :  { %v808_v1 = vmul.f32 %v807_v11, %v799_v12 }
 0x270   :  { %v856_v35 = vadd.f32 0.112945676, %v855_v0  ;;  %v820_v15 = vadd.f32 1.0, %v819_v2  ;;  %v845_v57 = vadd.f32 0.05243302, %v844_v54 }
 0x271   :  { %v809_v5 = vadd.f32 1.1283791, %v808_v1 }
 0x272   :  { %v857_v55 = vmul.f32 %v856_v35, %v839_v56  ;;  %996 = vrcp.f32 %v820_v15  ;;  %v846_v58 = vmul.f32 %v845_v57, %v839_v56  ;;  %v832_v4 = vand.u32 2147483648, %v820_v15 }
 0x273   :  { %v830_v6 = vand.u32 2147483647, %v820_v15  ;;  %vm826_vm5 = vweird.f32 %v820_v15  ;;  %v810_v13 = vmul.f32 %v809_v5, %v1525_v14 }
 0x274   :  { %v858_v25 = vadd.f32 0.4994258, %v857_v55  ;;  %v847_v52 = vadd.f32 0.18741608, %v846_v58  ;;  %v833_v20 = vor.u32 1.1754944e-38, %v832_v4 }
 0x275   :  { %vm831_vm7 = vcmp.eq.f32.partialorder %v830_v6, 8.507059e+37 }
 0x276   :  { %v859_v48 = vmul.f32 %v858_v25, %v839_v56  ;;  %v848_v33 = vmul.f32 %v847_v52, %v839_v56 }
 0x278   :  { %v860_v10 = vadd.f32 1.0, %v859_v48  ;;  %v997_v63 = vpop.eup %996  ;;  %v849_v59 = vadd.f32 1.1283791, %v848_v33 }
 0x279   :  { %v822_v61 = vmul.f32 %v997_v63, %v820_v15  ;;  %vm827_vm4 = vweird.f32 %v997_v63 }
 0x27a   :  { %998 = vrcp.f32 %v860_v10  ;;  %vm828_vm6 = vmor %vm826_vm5, %vm827_vm4  ;;  %v872_v50 = vand.u32 2147483648, %v860_v10  ;;  %v870_v34 = vand.u32 2147483647, %v860_v10  ;;  %vm866_vm9 = vweird.f32 %v860_v10 }
 0x27b   :  { %v823_v38 = vsub.f32 1.0, %v822_v61  ;;  %v850_v28 = vmul.f32 %v849_v59, %v1532_v36  ;;  %v61_v36 = vld [vmem:[%s1554_s7] sm:$0x3] }
 0x27c   :  { %v873_v16 = vor.u32 1.1754944e-38, %v872_v50  ;;  %vm871_vm11 = vcmp.eq.f32.partialorder %v870_v34, 8.507059e+37 }
 0x27d   :  { %v824_v23 = vmul.f32 %v997_v63, %v823_v38 }
 0x27f   :  { %v825_v9 = vadd.f32 %v997_v63, %v824_v23 }
 0x280   :  { %v999_v7 = vpop.eup %998 }
 0x281   :  { %v862_v51 = vmul.f32 %v999_v7, %v860_v10  ;;  %v829_v53 = vsel %vm828_vm6, %v997_v63, %v825_v9  ;;  %vm867_vm8 = vweird.f32 %v999_v7 }
 0x282   :  { %v834_v47 = vsel %vm831_vm7, %v833_v20, %v829_v53  ;;  %vm868_vm10 = vmor %vm866_vm9, %vm867_vm8 }
 0x283   :  { %v863_v43 = vsub.f32 1.0, %v862_v51  ;;  %v835_v12 = vmul.f32 %v834_v47, %v810_v13 }
 0x285   :  { %v864_v41 = vmul.f32 %v999_v7, %v863_v43  ;;  %v957_v40 = vclamps-f32 %v835_v12, 1.0 }
 0x287   :  { %v865_v29 = vadd.f32 %v999_v7, %v864_v41  ;;  %v878_v56 = vadd.f32 1.0, %v957_v40 }
 0x289   :  { %v869_v26 = vsel %vm868_vm10, %v999_v7, %v865_v29  ;;  %v880_v19 = vmul.f32 %v878_v56, %v794_v24 }
 0x28a   :  { %v874_v17 = vsel %vm871_vm11, %v873_v16, %v869_v26 }
 0x28b   :  { %v875_v32 = vmul.f32 %v874_v17, %v850_v28 }
 0x28d   :  { %v958_v14 = vclamps-f32 %v875_v32, 1.0 }
 0x28f   :  { %v879_v30 = vadd.f32 1.0, %v958_v14 }
 0x291   :  { %v881_v27 = vmul.f32 %v879_v30, %v795_v22 }
 0x293   :  { %v882_v3 = vpack.c.bf16 %v881_v27, %v880_v19 }
 0x295   :  { %899 = vmatpush.bf16.msrb.mxu3 %v882_v3 }
 0x298   :  { %959 = vmatmul.msk.bf16.vlgmr.msrb.gmra.mxu3 %vm888_vm12, %v61_v36 }
 0x31b   :  { %v901_v42 = vpop.f32.mrf.mxu3 }
 0x31c   :  { %v902_v21 = vadd.f32 %v901_v42, %v886_v39 }
 0x31e   :  { %905 = vst [vmem:[%s1555_s9] sm:$0xf] %v902_v21 }
 0x323   :  { %v903_v31 = vpop.f32.mrf.mxu3 }

</bundles_post_ra>
